<compile_context>
chip_gen: v7x
topology: tpu7x:2x2x1
jax: 0.10.0
libtpu: 0.0.40
codegen_flags: <defaults>
</compile_context>

<pallas_src>
import functools

import jax
import jax.numpy as jnp
from jax.experimental import pallas as pl
from jax.experimental.pallas import tpu as pltpu

# ---------------------------------------------------------------------------
# Config (small shapes consistent with the module)
# ---------------------------------------------------------------------------
BATCH = 2
IN_CH = 4
H = W = 16
HW = H * W
KSIZE = 3                 # conv kernel, padding=1 (same)
KK = KSIZE * KSIZE
FEAT_DIM = 32             # match_enc_feature_dim (= backbone fc.in_features)
PROJ_HIDDEN = 512         # fixed in __init__
PROJECTION_DIM = 128      # args['projection_dim']

HALF = jnp.bfloat16       # TPU-native half precision (see TODO above)


def _nbytes(a):
    return int(a.size) * a.dtype.itemsize


# ---------------------------------------------------------------------------
# pltpu.roll direction probe (one-time, cached) — makes the in-kernel shift
# independent of the rotate-op sign convention.
# ---------------------------------------------------------------------------
def _roll_probe_kernel(x_ref, o_ref):
    o_ref[...] = pltpu.roll(x_ref[...], shift=1, axis=1)


@functools.lru_cache(maxsize=1)
def _roll_matches_numpy():
    x = jax.lax.broadcasted_iota(jnp.float32, (8, 128), 1)
    r = pl.pallas_call(
        _roll_probe_kernel,
        out_shape=jax.ShapeDtypeStruct((8, 128), jnp.float32),
    )(x)
    # np.roll semantics: result[0] == x[-1] == 127 ; opposite: result[0] == 1.
    return bool(float(r[0, 0]) == 127.0)


def _shift_lanes(x, s, roll_like_np):
    """result[..., p] = x[..., (p + s) % n] along the minor (lane) axis."""
    n = x.shape[-1]
    s = s % n
    if s == 0:
        return x
    shift = (n - s) if roll_like_np else s
    return pltpu.roll(x, shift=shift, axis=x.ndim - 1)


# ---------------------------------------------------------------------------
# Pallas kernels
# ---------------------------------------------------------------------------
def _backbone_body(x_ref, w_ref, b_ref, roll_like_np):
    # x_ref: (B*C, HW)        f32   raw image, (batch, channel) rows, pixels on lanes
    # w_ref: (KK, B*F, B*C)   bf16  per-tap block-diagonal conv weights
    # b_ref: (B*F, 1)         f32   conv bias replicated per batch
    xin = x_ref[...]                                           # (B*C, HW) f32
    bc, hw = xin.shape
    bf = w_ref.shape[1]
    nb = bf // FEAT_DIM                                        # batch

    # Destination-pixel coordinates (hoisted out of the tap loop).
    p = jax.lax.broadcasted_iota(jnp.int32, (1, hw), 1)
    yy = p // W
    xx = p - yy * W

    # In-kernel im2col: 9 shifted + masked taps, each a plain 2-D bf16 matmul
    # accumulated into a lane-dense (B*F, HW) f32 accumulator.
    acc = jnp.zeros((bf, hw), jnp.float32)
    for dy in range(KSIZE):
        for dx in range(KSIZE):
            oy, ox = dy - KSIZE // 2, dx - KSIZE // 2
            shifted = _shift_lanes(xin, oy * W + ox, roll_like_np)   # XLU lane roll
            valid = ((yy + oy >= 0) & (yy + oy < H) &
                     (xx + ox >= 0) & (xx + ox < W))                 # (1, HW)
            tap = jnp.where(valid, shifted, 0.0).astype(HALF)        # (B*C, HW) bf16
            acc = acc + jnp.dot(w_ref[dy * KSIZE + dx], tap,
                                preferred_element_type=jnp.float32)  # (B*F, HW)

    conv = jnp.maximum(acc + b_ref[...], 0.0)                  # bias + ReLU, f32
    # Global average pool: split the sublane dim at a x8 boundary (layout no-op)
    # and lane-reduce — no pooling matmul, no transpose.
    conv = conv.reshape(nb, FEAT_DIM, hw)
    return jnp.mean(conv, axis=-1)                             # (B, F) f32


def _backbone_kernel(x_ref, w_ref, b_ref, feat_ref, *, roll_like_np):
    feat_ref[...] = _backbone_body(x_ref, w_ref, b_ref, roll_like_np)


def _fused_kernel(x_ref, w_ref, b_ref, w1_ref, b1_ref, w2_ref, b2_ref,
                  feat_ref, emb_ref, *, roll_like_np):
    # Backbone: in-kernel im2col conv -> ReLU -> lane-reduce global-avg-pool.
    feat = _backbone_body(x_ref, w_ref, b_ref, roll_like_np)   # (B, F) f32
    feat_ref[...] = feat

    # Projector (torch .half()): bf16 MXU operands, f32 accumulation.
    # Bias adds / ReLU stay in f32 (v5e has no bf16 VPU; free on v6e/v7x).
    h = jnp.dot(feat.astype(HALF), w1_ref[...],
                preferred_element_type=jnp.float32)            # (B, 512) f32
    h = jnp.maximum(h + b1_ref[...], 0.0).astype(HALF)
    e = jnp.dot(h, w2_ref[...], preferred_element_type=jnp.float32)
    emb_ref[...] = (e + b2_ref[...]).astype(emb_ref.dtype)     # (B, P) bf16


# ---------------------------------------------------------------------------
# Parameter init / one-time prepare, forward
# ---------------------------------------------------------------------------
def init_params(key):
    """Raw (PyTorch-layout) parameters."""
    k0, k1, k2, k3 = jax.random.split(key, 4)
    conv_w = jax.random.normal(k0, (FEAT_DIM, IN_CH, KSIZE, KSIZE), jnp.float32)
    conv_w = conv_w * (1.0 / (IN_CH * KSIZE * KSIZE) ** 0.5)
    conv_b = 0.01 * jax.random.normal(k1, (FEAT_DIM,), jnp.float32)
    w1 = (jax.random.normal(k2, (FEAT_DIM, PROJ_HIDDEN), jnp.float32)
          * (1.0 / FEAT_DIM ** 0.5)).astype(HALF)
    b1 = jnp.zeros((PROJ_HIDDEN,), HALF)
    w2 = (jax.random.normal(k3, (PROJ_HIDDEN, PROJECTION_DIM), jnp.float32)
          * (1.0 / PROJ_HIDDEN ** 0.5)).astype(HALF)
    b2 = jnp.zeros((PROJECTION_DIM,), HALF)
    return dict(conv_w=conv_w, conv_b=conv_b, w1=w1, b1=b1, w2=w2, b2=b2)


def prepare_params(params, batch):
    """One-time: put frozen weights in matmul-ready layouts (hoisted out of forward)."""
    # (F, C, K, K) -> (KK, F, C), tap-major ordering matching the kernel loop.
    w_t = jnp.transpose(params["conv_w"], (2, 3, 0, 1)).reshape(KK, FEAT_DIM, IN_CH)
    # Per-tap block-diagonal weights (KK, B*F, B*C) so each tap is one plain 2-D
    # bf16 matmul over the (B*C, HW) slab.  O(B^2*F*C) zeros — 2 KiB at B=2;
    # switch to a batched dot_general if batch grows.
    eye = jnp.eye(batch, dtype=jnp.float32)
    w_taps = jnp.stack([jnp.kron(eye, w_t[t]) for t in range(KK)]).astype(HALF)
    b_col = jnp.tile(params["conv_b"].astype(jnp.float32),
                     (batch,)).reshape(batch * FEAT_DIM, 1)
    return dict(
        w_taps=w_taps,                                          # (KK, B*F, B*C) bf16
        b_col=b_col,                                            # (B*F, 1) f32
        w1=params["w1"],                                        # (F, 512) bf16
        b1_row=params["b1"].astype(jnp.float32)[None, :],       # (1, 512) f32
        w2=params["w2"],                                        # (512, P) bf16
        b2_row=params["b2"].astype(jnp.float32)[None, :],       # (1, P)   f32
    )


def match_encoder_forward(prep, x, only_feats=False):
    """Mirrors MatchEncoder.forward: returns {'feat': ..., 'emb': ...}."""
    B, C, Hh, Ww = x.shape
    hw = Hh * Ww
    roll_like_np = _roll_matches_numpy()

    # Free, layout-preserving reshape: (B, C, H, W) -> (B*C, H*W).  The im2col
    # itself happens inside the kernel, so activation HBM traffic is 1x input.
    x2d = x.reshape(B * C, hw)

    backbone_args = (x2d, prep["w_taps"], prep["b_col"])
    backbone_specs = [
        pl.BlockSpec((B * C, hw), lambda i: (0, 0)),
        pl.BlockSpec((KK, B * FEAT_DIM, B * C), lambda i: (0, 0, 0)),
        pl.BlockSpec((B * FEAT_DIM, 1), lambda i: (0, 0)),
    ]

    bb_flops = 2 * KK * (B * FEAT_DIM) * (B * C) * hw + B * FEAT_DIM * hw
    bb_bytes = sum(_nbytes(a) for a in backbone_args) + B * FEAT_DIM * 4
    # grid=(1,) with full-array blocks: nothing is near VMEM limits on any
    # generation (incl. v7x's 64 MiB); extra grid steps would only add overhead.
    cparams = pltpu.CompilerParams(dimension_semantics=("arbitrary",))

    if only_feats:
        feat = pl.pallas_call(
            functools.partial(_backbone_kernel, roll_like_np=roll_like_np),
            out_shape=jax.ShapeDtypeStruct((B, FEAT_DIM), jnp.float32),
            grid=(1,),
            in_specs=backbone_specs,
            out_specs=pl.BlockSpec((B, FEAT_DIM), lambda i: (0, 0)),
            compiler_params=cparams,
            cost_estimate=pl.CostEstimate(
                flops=bb_flops, transcendentals=0, bytes_accessed=bb_bytes),
        )(*backbone_args)
        return {"feat": feat}

    proj_args = (prep["w1"], prep["b1_row"], prep["w2"], prep["b2_row"])
    flops = bb_flops + 2 * (B * FEAT_DIM * PROJ_HIDDEN
                            + B * PROJ_HIDDEN * PROJECTION_DIM)
    bytes_accessed = (bb_bytes + sum(_nbytes(a) for a in proj_args)
                      + B * PROJECTION_DIM * 2)

    feat, emb = pl.pallas_call(
        functools.partial(_fused_kernel, roll_like_np=roll_like_np),
        out_shape=(jax.ShapeDtypeStruct((B, FEAT_DIM), jnp.float32),
                   jax.ShapeDtypeStruct((B, PROJECTION_DIM), HALF)),
        grid=(1,),
        in_specs=backbone_specs + [
            pl.BlockSpec((FEAT_DIM, PROJ_HIDDEN), lambda i: (0, 0)),
            pl.BlockSpec((1, PROJ_HIDDEN), lambda i: (0, 0)),
            pl.BlockSpec((PROJ_HIDDEN, PROJECTION_DIM), lambda i: (0, 0)),
            pl.BlockSpec((1, PROJECTION_DIM), lambda i: (0, 0)),
        ],
        out_specs=(pl.BlockSpec((B, FEAT_DIM), lambda i: (0, 0)),
                   pl.BlockSpec((B, PROJECTION_DIM), lambda i: (0, 0))),
        compiler_params=cparams,
        cost_estimate=pl.CostEstimate(
            flops=flops, transcendentals=0, bytes_accessed=bytes_accessed),
    )(*backbone_args, *proj_args)

    return {"feat": feat, "emb": emb}


if __name__ == "__main__":
    key = jax.random.PRNGKey(0)
    pkey, xkey = jax.random.split(key)
    raw_params = init_params(pkey)
    prep = prepare_params(raw_params, BATCH)                 # one-time weight prep
    x = jax.random.normal(xkey, (BATCH, IN_CH, H, W), jnp.float32)

    out = match_encoder_forward(prep, x, only_feats=False)
    jax.block_until_ready(out["feat"])
    jax.block_until_ready(out["emb"])

    assert out["feat"].shape == (BATCH, FEAT_DIM) and out["feat"].dtype == jnp.float32
    assert out["emb"].shape == (BATCH, PROJECTION_DIM) and out["emb"].dtype == HALF

    # only_feats path
    feats_only = match_encoder_forward(prep, x, only_feats=True)
    jax.block_until_ready(feats_only["feat"])
    assert feats_only["feat"].shape == (BATCH, FEAT_DIM)

    # Reference backbone: conv3x3 (pad=1) -> bias -> ReLU -> global average pool.
    ref_conv = jax.lax.conv_general_dilated(
        x, raw_params["conv_w"], window_strides=(1, 1), padding="SAME",
        dimension_numbers=("NCHW", "OIHW", "NCHW"))
    ref_feat = jnp.mean(
        jnp.maximum(ref_conv + raw_params["conv_b"][None, :, None, None], 0.0),
        axis=(2, 3))
    # bf16 MXU operands drift feat by ~1e-3 vs. the all-f32 reference.
    assert bool(jnp.allclose(out["feat"], ref_feat, rtol=3e-2, atol=3e-2)), (
        float(jnp.max(jnp.abs(out["feat"] - ref_feat))))
    assert bool(jnp.allclose(feats_only["feat"], out["feat"], rtol=1e-3, atol=1e-3))

    # Reference projector (bf16 operands, f32 accumulation).
    f16 = ref_feat.astype(HALF).astype(jnp.float32)
    ref_h = jnp.maximum(
        f16 @ raw_params["w1"].astype(jnp.float32)
        + raw_params["b1"].astype(jnp.float32), 0.0)
    ref_emb = (ref_h.astype(HALF).astype(jnp.float32)
               @ raw_params["w2"].astype(jnp.float32)
               + raw_params["b2"].astype(jnp.float32))
    assert bool(jnp.allclose(out["emb"].astype(jnp.float32), ref_emb,
                             rtol=5e-2, atol=5e-2)), (
        float(jnp.max(jnp.abs(out["emb"].astype(jnp.float32) - ref_emb))))

    print("KERNEL_OK")
</pallas_src>

<mosaic_0001>
module attributes {stable_mosaic.version = 11 : i64} {
  func.func @_roll_probe_kernel(%arg0: memref<8x128xf32, #tpu.memory_space<vmem>>, %arg1: memref<8x128xf32, #tpu.memory_space<vmem>>) attributes {dimension_semantics = [], scalar_prefetch = 0 : i64, scratch_operands = 0 : i64, tpu.core_type = #tpu.core_type<tc>} {
    %c0 = arith.constant 0 : index
    %c0_0 = arith.constant 0 : index
    %0 = vector.load %arg0[%c0, %c0_0] : memref<8x128xf32, #tpu.memory_space<vmem>>, vector<8x128xf32>
    %c1_i32 = arith.constant 1 : i32
    %1 = tpu.dynamic_rotate %0 by %c1_i32 dim 1 : vector<8x128xf32>, i32 -> vector<8x128xf32>
    %c0_1 = arith.constant 0 : index
    %c0_2 = arith.constant 0 : index
    %2 = vector.load %arg1[%c0_1, %c0_2] : memref<8x128xf32, #tpu.memory_space<vmem>>, vector<8x128xf32>
    tpu.vector_store %arg1[%c0_1, %c0_2], %1 {strides = array<i32>} : memref<8x128xf32, #tpu.memory_space<vmem>>, vector<8x128xf32>,
    return
  }
}

</mosaic_0001>

<bundles_post_ra>
// kernel: tpu_custom_call.1
= control target key start
LH: loop header
LB: loop body
LE: loop exit
PB: predicated region body
PF: predicated region fallthrough
CT: control target
= control target key end

     0   :  { %6 = vsyncpa [#allocation3], 0  ;;  %s128_s0 = inlined_call_operand.hbm [shape: f32[8,128], index: 0, kind: input, shape index: {}]   ;;  %s129_s1 = inlined_call_operand.hbm [shape: f32[8,128], index: 1, kind: output, shape index: {}]  }
   0x1   :  { %7 = vsyncpa [#allocation4], 0  ;;  %s91_s6 = smov [#allocation2]   ;;  %s43_s10 = scalar_lea.hbm %s128_s0, 128 }
   0x2   :  { %s14_s7 = sshll.u32 %s91_s6, 4  ;;  %p44_p0 = scmp.ne.s32.totalorder %s128_s0, %s43_s10  ;;  %s15_s7 = int_to_ptr.vmem [resolvable:$true] %s14_s7 }
   0x3   :  { %p47_p1 = scmp.lt.u32.totalorder %s43_s10, %s128_s0 }
   0x5   :  { %p49_p2 = pnand %p47_p1, %p44_p0 }
   0x7   :  { %52 = shalt.err (!%p49_p2)
}
   0x8   :  { %s53_s15 = scalar_lea.vmem %s15_s7, 128  ;;  %p58_p4 = scmp.lt.s32.totalorder %s15_s7, %s15_s7 }
   0x9   :  { %p54_p3 = scmp.ne.s32.totalorder %s15_s7, %s53_s15  ;;  %p59_p5 = scmp.lt.s32.totalorder %s53_s15, %s53_s15 }
   0xb   :  { %p60_p6 = por %p59_p5, %p58_p4 }
   0xd   :  { %p61_p7 = pnand %p60_p6, %p54_p3 }
   0xf   :  { %64 = shalt.err (!%p61_p7)
}
  0x10   :  { %17 = dma.hbm_to_vmem [thread:$0]  %s128_s0, 128, %s15_s7, [#allocation3]  }
  0x11   :  { %87 = dma.done.wait [#allocation3], 128  }
  0x12   :  { %88 = vsyncadd [#allocation3], 4294967168  ;;  %v21_v0 = vld [vmem:[#allocation2] sm:$0xff]  ;;  %s92_s18 = smov 1   ;;  %s93_s19 = smov [#allocation5]  }
  0x13   :  { %22 = vrot.lane.b32.xlu0 %v21_v0, %s92_s18  ;;  %s31_s20 = sshll.u32 %s93_s19, 4  ;;  %s32_s20 = int_to_ptr.vmem [resolvable:$true] %s31_s20 }
  0x14   :  { %s65_s21 = scalar_lea.vmem %s32_s20, 128  ;;  %p70_p9 = scmp.lt.s32.totalorder %s32_s20, %s32_s20 }
  0x15   :  { %p66_p8 = scmp.ne.s32.totalorder %s32_s20, %s65_s21  ;;  %p71_p10 = scmp.lt.s32.totalorder %s65_s21, %s65_s21 }
  0x17   :  { %p72_p11 = por %p71_p10, %p70_p9 }
  0x19   :  { %p73_p12 = pnand %p72_p11, %p66_p8 }
  0x85   :  { %v23_v1 = vpop.permute.xlu0 %22 }
  0x86   :  { %24 = vst [vmem:[#allocation5] sm:$0xff] %v23_v1 }
  0x87   :  { %76 = shalt.err (!%p73_p12)
}
  0x88   :  { %s77_s0 = scalar_lea.hbm %s129_s1, 128 }
  0x89   :  { %p78_p13 = scmp.ne.s32.totalorder %s129_s1, %s77_s0  ;;  %p81_p0 = scmp.lt.u32.totalorder %s77_s0, %s129_s1 }
  0x8b   :  { %p83_p1 = pnand %p81_p0, %p78_p13 }
  0x8d   :  { %86 = shalt.err (!%p83_p1)
}
  0x8e   :  { %34 = dma.vmem_to_hbm [thread:$0]  %s32_s20, 128, %s129_s1, [#allocation4]  }
  0x8f   :  { %89 = dma.done.wait [#allocation4], 128  }
  0x90   :  { %90 = vsyncadd [#allocation4], 4294967168 }
  0x91   :  { %38 = vsyncpa [#allocation3], 1 }
  0x92   :  { %39 = vsyncpa [#allocation4], 1 }

</bundles_post_ra>
